<compile_context>
chip_gen: v5e
topology: v5e:2x2
jax: 0.10.0
libtpu: 0.0.40
codegen_flags: <defaults>
</compile_context>

<pallas_src>
import math

import jax
import jax.numpy as jnp
import numpy as np
from jax import lax
from jax.experimental import pallas as pl
from jax.experimental.pallas import tpu as pltpu

FHT_FACTOR = 1.0  # self.fht_factor


def _dft_complex(n):
    """Ortho-normalized complex DFT matrix, exp(-2*pi*i*j*k/n)/sqrt(n). Symmetric."""
    k = np.arange(n)
    return np.exp(-2j * np.pi * np.outer(k, k) / n) / np.sqrt(n)


def _hartley_weight(h, w):
    """High-frequency priority weight (eq. 11), identical to the PyTorch module."""
    xs = np.arange(h, dtype=np.float64)[:, None]
    ys = np.arange(w, dtype=np.float64)[None, :]
    wgt = (np.abs(h / 2.0 - xs) / (h / 2.0)) ** 2 + (np.abs(w / 2.0 - ys) / (w / 2.0)) ** 2
    wgt = np.exp(wgt)
    wgt = wgt - wgt.min()
    wgt = wgt / wgt.max()
    wgt = wgt + 0.0001
    return wgt.astype(np.float32)


def _choose_batch_block(N, C, H, W, vmem_budget=24 << 20):
    """Pick how many batch elements share one lane-dense (C*H, nb*W) grid block."""
    CH = C * H
    nb_unit = 128 // math.gcd(W, 128)     # smallest nb with (nb*W) % 128 == 0

    def round_up(x, m):
        return ((x + m - 1) // m) * m

    # Grow toward 256 MXU lanes (v6e/v7x width), but never pad beyond what the batch needs.
    nb = nb_unit
    while nb * W < 256 and nb < round_up(N, nb_unit):
        nb += nb_unit

    def footprint(nb_):
        blk = CH * nb_ * W * 4                                   # one f32 input block
        consts = 2 * CH * CH * 2 + 2 * (nb_ * W) ** 2 * 2 + CH * nb_ * W * 4
        # 2 inputs x 2 pipeline buffers + ~8 slab-sized f32 intermediates + constants
        return 4 * blk + 8 * blk + consts

    while nb > nb_unit and footprint(nb) > vmem_budget:
        nb -= nb_unit

    # Give v7x's second TensorCore a grid step when the batch is big enough.
    if -(-N // nb) == 1 and N > nb_unit:
        nb = round_up(-(-N // 2), nb_unit)
    return nb


def _hartley_loss_kernel(y_ref, yp_ref, mu_ref, mv_ref, a_ref, b_ref, wgt_ref, out_ref):
    # y_ref / yp_ref: (C*H, nb*W) lane-dense slab; rows = c*H + h, cols = b*W + w.
    # Only the difference is transformed (linearity of the DFT / Hartley transform).
    d32 = yp_ref[...] - y_ref[...]
    pix_sq = jnp.sum(d32 * d32)            # pixel SSE in f32 (one cross-lane reduce)

    d = d32.astype(jnp.bfloat16)           # bf16 MXU operands, f32 accumulation

    # W-axis ortho DFT, pre-combined into the Hartley pair on the host:
    #   u = d @ kron(I_nb, Cw - Sw),  v = d @ kron(I_nb, Cw + Sw)
    u = jnp.dot(d, mu_ref[...], preferred_element_type=jnp.float32)
    v = jnp.dot(d, mv_ref[...], preferred_element_type=jnp.float32)

    # (C,H)-axis DFT via the Kronecker matrix Fch = A + iB:
    #   Hartley(d) = Re(X) - Im(X) = A @ u - B @ v
    h = (jnp.dot(a_ref[...], u.astype(jnp.bfloat16), preferred_element_type=jnp.float32)
         - jnp.dot(b_ref[...], v.astype(jnp.bfloat16), preferred_element_type=jnp.float32))

    hw = h * wgt_ref[...]                  # frequency weight (f32, precomputed on host)
    fht_sq = jnp.sum(hw * hw)              # spectral SSE (one cross-lane reduce)

    # Emit the two partial sums into lanes 0/1 of this step's own lane-dense (8,128)
    # output block (pure vector ops; portable scalar-emit path).
    row = lax.broadcasted_iota(jnp.int32, (8, 128), 0)
    lane = lax.broadcasted_iota(jnp.int32, (8, 128), 1)
    out_ref[0] = jnp.where((row == 0) & (lane == 0), fht_sq,
                           jnp.where((row == 0) & (lane == 1), pix_sq, 0.0))


def hartley_perceptual_loss(y, y_pred, q_losses, *, fht_factor=FHT_FACTOR, batch_block=None):
    N, C, H, W = y.shape
    CH = C * H

    nb = int(batch_block) if batch_block is not None else _choose_batch_block(N, C, H, W)
    num_steps = -(-N // nb)
    total = num_steps * nb
    nbW = nb * W

    y = y.astype(jnp.float32)
    y_pred = y_pred.astype(jnp.float32)
    if total > N:
        pad = ((0, total - N), (0, 0), (0, 0), (0, 0))
        y = jnp.pad(y, pad)          # zero padding contributes 0 to both SSE terms
        y_pred = jnp.pad(y_pred, pad)

    # Lane-dense relayout in the wrapper: (N',C,H,W) -> (C,H,N',W) -> (C*H, N'*W).
    y2 = jnp.transpose(y, (1, 2, 0, 3)).reshape(CH, total * W)
    yp2 = jnp.transpose(y_pred, (1, 2, 0, 3)).reshape(CH, total * W)

    # Host-precomputed transform matrices and frequency weight.
    fw = _dft_complex(W)
    cw, sw = fw.real, fw.imag
    eye = np.eye(nb)
    mu = np.kron(eye, cw - sw).astype(np.float32)            # (nbW, nbW)  block-diag
    mv = np.kron(eye, cw + sw).astype(np.float32)            # (nbW, nbW)  block-diag
    fch = np.kron(_dft_complex(C), _dft_complex(H))          # (C*H, C*H) combined C,H DFT
    a_mat = np.ascontiguousarray(fch.real.astype(np.float32))
    b_mat = np.ascontiguousarray(fch.imag.astype(np.float32))
    wgt = np.ascontiguousarray(
        np.tile(np.tile(_hartley_weight(H, W), (C, 1)), (1, nb)))   # (C*H, nbW)

    # Explicit VMEM budget: inputs double-buffered, resident constants, slab temps.
    blk_bytes = CH * nbW * 4
    const_bytes = 2 * CH * CH * 2 + 2 * nbW * nbW * 2 + CH * nbW * 4
    vmem_need = 4 * blk_bytes + 8 * blk_bytes + const_bytes + 2 * 8 * 128 * 4
    vmem_limit = int(min(48 << 20, max(4 * vmem_need, 16 << 20)))

    flops = num_steps * (4 * CH * nbW * nbW + 4 * CH * CH * nbW + 6 * CH * nbW)
    bytes_accessed = 2 * CH * total * W * 4 + const_bytes + num_steps * 8 * 128 * 4

    partials = pl.pallas_call(
        _hartley_loss_kernel,
        grid=(num_steps,),
        in_specs=[
            pl.BlockSpec((CH, nbW), lambda g: (0, g)),             # y slab
            pl.BlockSpec((CH, nbW), lambda g: (0, g)),             # y_pred slab
            pl.BlockSpec(memory_space=pltpu.MemorySpace.VMEM),     # kron(I, Cw - Sw)  bf16
            pl.BlockSpec(memory_space=pltpu.MemorySpace.VMEM),     # kron(I, Cw + Sw)  bf16
            pl.BlockSpec(memory_space=pltpu.MemorySpace.VMEM),     # Re(Fc (x) Fh)     bf16
            pl.BlockSpec(memory_space=pltpu.MemorySpace.VMEM),     # Im(Fc (x) Fh)     bf16
            pl.BlockSpec(memory_space=pltpu.MemorySpace.VMEM),     # frequency weight  f32
        ],
        out_specs=pl.BlockSpec((1, 8, 128), lambda g: (g, 0, 0)),
        out_shape=jax.ShapeDtypeStruct((num_steps, 8, 128), jnp.float32),
        compiler_params=pltpu.CompilerParams(
            dimension_semantics=("parallel",),
            vmem_limit_bytes=vmem_limit),
        cost_estimate=pl.CostEstimate(
            flops=int(flops), transcendentals=0, bytes_accessed=int(bytes_accessed)),
    )(
        y2, yp2,
        jnp.asarray(mu, dtype=jnp.bfloat16),
        jnp.asarray(mv, dtype=jnp.bfloat16),
        jnp.asarray(a_mat, dtype=jnp.bfloat16),
        jnp.asarray(b_mat, dtype=jnp.bfloat16),
        jnp.asarray(wgt),
    )

    # Final reduction + quantization losses in plain JAX (keeps the grid parallel).
    n_elem = jnp.float32(N * C * H * W)
    fht_sq = jnp.sum(partials[:, 0, 0])
    pix_sq = jnp.sum(partials[:, 0, 1])
    loss = 0.5 * (fht_sq / n_elem) * jnp.float32(fht_factor)   # spectral (Hartley) MSE
    loss = loss + pix_sq / n_elem                              # pixel MSE
    loss = loss + jnp.sum(q_losses.astype(jnp.float32))        # quantization losses
    return loss


def reference_loss(y, y_pred, q_losses, *, fht_factor=FHT_FACTOR):
    """Pure-JAX reference mirroring the PyTorch forward (minus LPIPS)."""
    fy = jnp.fft.fftn(y, axes=(1, 2, 3), norm="ortho")
    fp = jnp.fft.fftn(y_pred, axes=(1, 2, 3), norm="ortho")
    ht_y = fy.real - fy.imag
    ht_p = fp.real - fp.imag
    H, W = y.shape[2], y.shape[3]
    xs = jnp.arange(H, dtype=jnp.float32)[:, None]
    ys = jnp.arange(W, dtype=jnp.float32)[None, :]
    wgt = (jnp.abs(H / 2.0 - xs) / (H / 2.0)) ** 2 + (jnp.abs(W / 2.0 - ys) / (W / 2.0)) ** 2
    wgt = jnp.exp(wgt)
    wgt = wgt - jnp.min(wgt)
    wgt = wgt / jnp.max(wgt)
    wgt = wgt + 0.0001
    loss = 0.5 * jnp.mean((ht_p * wgt - ht_y * wgt) ** 2) * fht_factor
    loss = loss + jnp.mean((y_pred - y) ** 2)
    loss = loss + jnp.sum(q_losses)
    return loss


if __name__ == "__main__":
    key = jax.random.PRNGKey(0)
    k1, k2, k3 = jax.random.split(key, 3)
    N, C, H, W = 2, 4, 16, 16
    y = jax.random.uniform(k1, (N, C, H, W), dtype=jnp.float32)
    y_pred = jax.random.uniform(k2, (N, C, H, W), dtype=jnp.float32)
    q_losses = jax.random.uniform(k3, (2,), dtype=jnp.float32) * 0.1

    loss = jax.block_until_ready(hartley_perceptual_loss(y, y_pred, q_losses))
    ref = jax.block_until_ready(reference_loss(y, y_pred, q_losses))

    rel_err = abs(float(loss) - float(ref)) / max(abs(float(ref)), 1e-6)
    if rel_err > 1e-2:
        raise AssertionError(f"kernel={float(loss)} ref={float(ref)} rel_err={rel_err}")

    print("KERNEL_OK")
</pallas_src>

<mosaic_0001>
module attributes {stable_mosaic.version = 11 : i64} {
  func.func @_hartley_loss_kernel(%arg0: i32, %arg1: memref<64x128xf32, #tpu.memory_space<vmem>>, %arg2: memref<64x128xf32, #tpu.memory_space<vmem>>, %arg3: memref<128x128xbf16, #tpu.memory_space<vmem>>, %arg4: memref<128x128xbf16, #tpu.memory_space<vmem>>, %arg5: memref<64x64xbf16, #tpu.memory_space<vmem>>, %arg6: memref<64x64xbf16, #tpu.memory_space<vmem>>, %arg7: memref<64x128xf32, #tpu.memory_space<vmem>>, %arg8: memref<1x8x128xf32, #tpu.memory_space<vmem>>) attributes {dimension_semantics = [#tpu.dimension_semantics<parallel>], iteration_bounds = array<i64: 1>, scalar_prefetch = 0 : i64, scratch_operands = 0 : i64, tpu.core_type = #tpu.core_type<tc>, window_params = [{transform_indices = @transform_0, window_bounds = array<i64: 64, 128>}, {transform_indices = @transform_1, window_bounds = array<i64: 64, 128>}, {pipeline_mode = #tpu.pipeline_mode<synchronous>, transform_indices = @transform_2, window_bounds = array<i64: 128, 128>}, {pipeline_mode = #tpu.pipeline_mode<synchronous>, transform_indices = @transform_3, window_bounds = array<i64: 128, 128>}, {pipeline_mode = #tpu.pipeline_mode<synchronous>, transform_indices = @transform_4, window_bounds = array<i64: 64, 64>}, {pipeline_mode = #tpu.pipeline_mode<synchronous>, transform_indices = @transform_5, window_bounds = array<i64: 64, 64>}, {pipeline_mode = #tpu.pipeline_mode<synchronous>, transform_indices = @transform_6, window_bounds = array<i64: 64, 128>}, {transform_indices = @transform_7, window_bounds = array<i64: 1, 8, 128>}]} {
    %c0 = arith.constant 0 : index
    %c0_0 = arith.constant 0 : index
    %0 = vector.load %arg2[%c0, %c0_0] : memref<64x128xf32, #tpu.memory_space<vmem>>, vector<64x128xf32>
    %c0_1 = arith.constant 0 : index
    %c0_2 = arith.constant 0 : index
    %1 = vector.load %arg1[%c0_1, %c0_2] : memref<64x128xf32, #tpu.memory_space<vmem>>, vector<64x128xf32>
    %2 = arith.subf %0, %1 : vector<64x128xf32>
    %3 = arith.mulf %2, %2 : vector<64x128xf32>
    %4 = vector.shape_cast %3 : vector<64x128xf32> to vector<1x64x128xf32>
    %cst = arith.constant dense<0.000000e+00> : vector<1xf32>
    %5 = vector.multi_reduction <add>, %4, %cst [1, 2] : vector<1x64x128xf32> to vector<1xf32>
    %6 = vector.shape_cast %5 : vector<1xf32> to vector<1x1x1xf32>
    %7 = vector.extract %6[0, 0, 0] : f32 from vector<1x1x1xf32>
    %8 = arith.truncf %2 : vector<64x128xf32> to vector<64x128xbf16>
    %c0_3 = arith.constant 0 : index
    %c0_4 = arith.constant 0 : index
    %9 = vector.load %arg3[%c0_3, %c0_4] : memref<128x128xbf16, #tpu.memory_space<vmem>>, vector<128x128xbf16>
    %cst_5 = arith.constant dense<0.000000e+00> : vector<64x128xf32>
    %10 = tpu.matmul %8, %9, %cst_5 {dimension_numbers = #tpu.dot_dimension_numbers<[1], [0], [0], [1], [0, 0, 1, 1], [], []>} : vector<64x128xbf16>, vector<128x128xbf16>, vector<64x128xf32> -> vector<64x128xf32>
    %c0_6 = arith.constant 0 : index
    %c0_7 = arith.constant 0 : index
    %11 = vector.load %arg4[%c0_6, %c0_7] : memref<128x128xbf16, #tpu.memory_space<vmem>>, vector<128x128xbf16>
    %cst_8 = arith.constant dense<0.000000e+00> : vector<64x128xf32>
    %12 = tpu.matmul %8, %11, %cst_8 {dimension_numbers = #tpu.dot_dimension_numbers<[1], [0], [0], [1], [0, 0, 1, 1], [], []>} : vector<64x128xbf16>, vector<128x128xbf16>, vector<64x128xf32> -> vector<64x128xf32>
    %c0_9 = arith.constant 0 : index
    %c0_10 = arith.constant 0 : index
    %13 = vector.load %arg5[%c0_9, %c0_10] : memref<64x64xbf16, #tpu.memory_space<vmem>>, vector<64x64xbf16>
    %14 = arith.truncf %10 : vector<64x128xf32> to vector<64x128xbf16>
    %cst_11 = arith.constant dense<0.000000e+00> : vector<64x128xf32>
    %15 = tpu.matmul %13, %14, %cst_11 {dimension_numbers = #tpu.dot_dimension_numbers<[1], [0], [0], [1], [0, 0, 1, 1], [], []>} : vector<64x64xbf16>, vector<64x128xbf16>, vector<64x128xf32> -> vector<64x128xf32>
    %c0_12 = arith.constant 0 : index
    %c0_13 = arith.constant 0 : index
    %16 = vector.load %arg6[%c0_12, %c0_13] : memref<64x64xbf16, #tpu.memory_space<vmem>>, vector<64x64xbf16>
    %17 = arith.truncf %12 : vector<64x128xf32> to vector<64x128xbf16>
    %cst_14 = arith.constant dense<0.000000e+00> : vector<64x128xf32>
    %18 = tpu.matmul %16, %17, %cst_14 {dimension_numbers = #tpu.dot_dimension_numbers<[1], [0], [0], [1], [0, 0, 1, 1], [], []>} : vector<64x64xbf16>, vector<64x128xbf16>, vector<64x128xf32> -> vector<64x128xf32>
    %19 = arith.subf %15, %18 : vector<64x128xf32>
    %c0_15 = arith.constant 0 : index
    %c0_16 = arith.constant 0 : index
    %20 = vector.load %arg7[%c0_15, %c0_16] : memref<64x128xf32, #tpu.memory_space<vmem>>, vector<64x128xf32>
    %21 = arith.mulf %19, %20 : vector<64x128xf32>
    %22 = arith.mulf %21, %21 : vector<64x128xf32>
    %23 = vector.shape_cast %22 : vector<64x128xf32> to vector<1x64x128xf32>
    %cst_17 = arith.constant dense<0.000000e+00> : vector<1xf32>
    %24 = vector.multi_reduction <add>, %23, %cst_17 [1, 2] : vector<1x64x128xf32> to vector<1xf32>
    %25 = vector.shape_cast %24 : vector<1xf32> to vector<1x1x1xf32>
    %26 = vector.extract %25[0, 0, 0] : f32 from vector<1x1x1xf32>
    %27 = tpu.iota {dimensions = array<i32: 0>} : vector<8x128xi32>
    %28 = tpu.iota {dimensions = array<i32: 1>} : vector<8x128xi32>
    %c0_i32 = arith.constant 0 : i32
    %29 = vector.broadcast %c0_i32 : i32 to vector<8x128xi32>
    %30 = arith.cmpi eq, %27, %29 : vector<8x128xi32>
    %c0_i32_18 = arith.constant 0 : i32
    %31 = vector.broadcast %c0_i32_18 : i32 to vector<8x128xi32>
    %32 = arith.cmpi eq, %28, %31 : vector<8x128xi32>
    %33 = arith.andi %30, %32 : vector<8x128xi1>
    %c0_i32_19 = arith.constant 0 : i32
    %34 = vector.broadcast %c0_i32_19 : i32 to vector<8x128xi32>
    %35 = arith.cmpi eq, %27, %34 : vector<8x128xi32>
    %c1_i32 = arith.constant 1 : i32
    %36 = vector.broadcast %c1_i32 : i32 to vector<8x128xi32>
    %37 = arith.cmpi eq, %28, %36 : vector<8x128xi32>
    %38 = arith.andi %35, %37 : vector<8x128xi1>
    %cst_20 = arith.constant 0.000000e+00 : f32
    %39 = vector.broadcast %7 : f32 to vector<8x128xf32>
    %40 = vector.broadcast %cst_20 : f32 to vector<8x128xf32>
    %41 = arith.select %38, %39, %40 : vector<8x128xi1>, vector<8x128xf32>
    %42 = vector.broadcast %26 : f32 to vector<8x128xf32>
    %43 = arith.select %33, %42, %41 : vector<8x128xi1>, vector<8x128xf32>
    %c0_21 = arith.constant 0 : index
    %c0_22 = arith.constant 0 : index
    %c0_23 = arith.constant 0 : index
    %44 = vector.load %arg8[%c0_21, %c0_22, %c0_23] : memref<1x8x128xf32, #tpu.memory_space<vmem>>, vector<1x8x128xf32>
    %45 = vector.shape_cast %44 : vector<1x8x128xf32> to vector<8x128xf32>
    %46 = vector.shape_cast %43 : vector<8x128xf32> to vector<1x8x128xf32>
    tpu.vector_store %arg8[%c0_21, %c0_22, %c0_23], %46 {strides = array<i32>} : memref<1x8x128xf32, #tpu.memory_space<vmem>>, vector<1x8x128xf32>,
    return
  }
  func.func @transform_0(%arg0: i32) -> (i32, i32) {
    %c0_i32 = arith.constant 0 : i32
    %c0_i32_0 = arith.constant 0 : i32
    return %c0_i32, %arg0 : i32, i32
  }
  func.func @transform_1(%arg0: i32) -> (i32, i32) {
    %c0_i32 = arith.constant 0 : i32
    %c0_i32_0 = arith.constant 0 : i32
    return %c0_i32, %arg0 : i32, i32
  }
  func.func @transform_2(%arg0: i32) -> (i32, i32) {
    %c0_i32 = arith.constant 0 : i32
    %c0_i32_0 = arith.constant 0 : i32
    %c0_i32_1 = arith.constant 0 : i32
    return %c0_i32, %c0_i32_0 : i32, i32
  }
  func.func @transform_3(%arg0: i32) -> (i32, i32) {
    %c0_i32 = arith.constant 0 : i32
    %c0_i32_0 = arith.constant 0 : i32
    %c0_i32_1 = arith.constant 0 : i32
    return %c0_i32, %c0_i32_0 : i32, i32
  }
  func.func @transform_4(%arg0: i32) -> (i32, i32) {
    %c0_i32 = arith.constant 0 : i32
    %c0_i32_0 = arith.constant 0 : i32
    %c0_i32_1 = arith.constant 0 : i32
    return %c0_i32, %c0_i32_0 : i32, i32
  }
  func.func @transform_5(%arg0: i32) -> (i32, i32) {
    %c0_i32 = arith.constant 0 : i32
    %c0_i32_0 = arith.constant 0 : i32
    %c0_i32_1 = arith.constant 0 : i32
    return %c0_i32, %c0_i32_0 : i32, i32
  }
  func.func @transform_6(%arg0: i32) -> (i32, i32) {
    %c0_i32 = arith.constant 0 : i32
    %c0_i32_0 = arith.constant 0 : i32
    %c0_i32_1 = arith.constant 0 : i32
    return %c0_i32, %c0_i32_0 : i32, i32
  }
  func.func @transform_7(%arg0: i32) -> (i32, i32, i32) {
    %c0_i32 = arith.constant 0 : i32
    %c0_i32_0 = arith.constant 0 : i32
    %c0_i32_1 = arith.constant 0 : i32
    return %arg0, %c0_i32, %c0_i32_0 : i32, i32, i32
  }
}

</mosaic_0001>

<bundles_post_ra>
// kernel: tpu_custom_call.1
= control target key start
LH: loop header
LB: loop body
LE: loop exit
PB: predicated region body
PF: predicated region fallthrough
CT: control target
= control target key end

     0   :  { %12 = vsyncpa [#allocation3], 0  ;;  %s1048_s0 = inlined_call_operand.hbm [shape: f32[64,128], index: 0, kind: input, shape index: {}]   ;;  %s1049_s1 = inlined_call_operand.hbm [shape: f32[64,128], index: 1, kind: input, shape index: {}]   ;;  %s1050_s2 = inlined_call_operand.hbm [shape: bf16[128,128], index: 2, kind: input, shape index: {}]   ;;  %s1051_s3 = inlined_call_operand.hbm [shape: bf16[128,128], index: 3, kind: input, shape index: {}]   ;;  %s1052_s4 = inlined_call_operand.hbm [shape: bf16[64,64], index: 4, kind: input, shape index: {}]   ;;  %s1053_s5 = inlined_call_operand.hbm [shape: bf16[64,64], index: 5, kind: input, shape index: {}]   ;;  %s1054_s6 = inlined_call_operand.hbm [shape: f32[64,128], index: 6, kind: input, shape index: {}]   ;;  %s1055_s7 = inlined_call_operand.hbm [shape: f32[1,8,128], index: 7, kind: output, shape index: {}]  }
   0x1   :  { %13 = vsyncpa [#allocation6], 0 }
   0x2   :  { %14 = vsyncpa [#allocation9], 0 }
   0x3   :  { %15 = vsyncpa [#allocation12], 0 }
   0x4   :  { %16 = vsyncpa [#allocation4], 0  ;;  %s34_s26 = sshll.u32 %s1049_s1, 4  ;;  %s950_s27 = smov [#allocation5]   ;;  %s35_s26 = int_to_ptr.hbm [resolvable:$true] %s34_s26 }
   0x5   :  { %s36_s28 = sshll.u32 %s950_s27, 4  ;;  %s951_s29 = smov 128   ;;  %s37_s28 = int_to_ptr.vmem [resolvable:$true] %s36_s28 }
   0x6   :  { %s952_s30 = smov 8   ;;  %s60_s10 = sshll.u32 %s1051_s3, 4  ;;  %s61_s10 = int_to_ptr.hbm [resolvable:$true] %s60_s10 }
   0x7   :  { %42 = dma.hbm_to_vmem [thread:$0]  %s35_s26, 1024, %s37_s28, [#allocation6], %s951_s29, %s951_s29, %s952_s30  }
   0x8   :  { %s953_s11 = smov [#allocation8]   ;;  %s86_s1 = sshll.u32 %s1053_s5, 4  ;;  %s87_s1 = int_to_ptr.hbm [resolvable:$true] %s86_s1 }
   0x9   :  { %s62_s12 = sshll.u32 %s953_s11, 4  ;;  %s954_s15 = smov 64   ;;  %s63_s12 = int_to_ptr.vmem [resolvable:$true] %s62_s12 }
   0xa   :  { %s955_s16 = smov 4   ;;  %s21_s19 = sshll.u32 %s1048_s0, 4  ;;  %s22_s19 = int_to_ptr.hbm [resolvable:$true] %s21_s19 }
   0xb   :  { %68 = dma.hbm_to_vmem [thread:$0]  %s61_s10, 1024, %s63_s12, [#allocation9], %s954_s15, %s954_s15, %s955_s16  }
   0xc   :  { %s956_s20 = smov [#allocation11]   ;;  %s957_s3 = smov [#allocation2]  }
   0xd   :  { %s88_s21 = sshll.u32 %s956_s20, 4  ;;  %s23_s22 = sshll.u32 %s957_s3, 4  ;;  %s89_s21 = int_to_ptr.vmem [resolvable:$true] %s88_s21  ;;  %s24_s22 = int_to_ptr.vmem [resolvable:$true] %s23_s22 }
   0xe   :  { %94 = dma.hbm_to_vmem [thread:$0]  %s87_s1, 512, %s89_s21, [#allocation12], %s954_s15, %s954_s15, %s955_s16  }
   0xf   :  { %s47_s5 = sshll.u32 %s1050_s2, 4  ;;  %s73_s0 = sshll.u32 %s1052_s4, 4  ;;  %s48_s5 = int_to_ptr.hbm [resolvable:$true] %s47_s5  ;;  %s74_s0 = int_to_ptr.hbm [resolvable:$true] %s73_s0 }
  0x10   :  { %29 = dma.hbm_to_vmem [thread:$0]  %s22_s19, 1024, %s24_s22, [#allocation3], %s951_s29, %s951_s29, %s952_s30  }
  0x11   :  { %s958_s27 = smov [#allocation7]   ;;  %s959_s8 = smov [#allocation10]  }
  0x12   :  { %s49_s28 = sshll.u32 %s958_s27, 4  ;;  %s75_s9 = sshll.u32 %s959_s8, 4  ;;  %s50_s28 = int_to_ptr.vmem [resolvable:$true] %s49_s28  ;;  %s76_s9 = int_to_ptr.vmem [resolvable:$true] %s75_s9 }
  0x13   :  { %55 = dma.hbm_to_vmem [thread:$0]  %s48_s5, 1024, %s50_s28, [#allocation6], %s954_s15, %s954_s15, %s955_s16  }
  0x14   :  { %s99_s2 = sshll.u32 %s1054_s6, 4  ;;  %s960_s12 = smov [#allocation13]   ;;  %s100_s2 = int_to_ptr.hbm [resolvable:$true] %s99_s2 }
  0x15   :  { %81 = dma.hbm_to_vmem [thread:$0]  %s74_s0, 512, %s76_s9, [#allocation9], %s954_s15, %s954_s15, %s955_s16  }
  0x16   :  { %s101_s13 = sshll.u32 %s960_s12, 4  ;;  %s102_s13 = int_to_ptr.vmem [resolvable:$true] %s101_s13 }
  0x17   :  { %107 = dma.hbm_to_vmem [thread:$0]  %s100_s2, 1024, %s102_s13, [#allocation12], %s951_s29, %s951_s29, %s952_s30  }
  0x18   :  { %940 = dma.done.wait [#allocation3], 1024  }
  0x19   :  { %941 = vsyncadd [#allocation3], 4294966272 }
  0x1a   :  { %942 = dma.done.wait [#allocation6], 2048  }
  0x1b   :  { %943 = vsyncadd [#allocation6], 4294965248 }
  0x1c   :  { %944 = dma.done.wait [#allocation9], 1536  }
  0x1d   :  { %945 = vsyncadd [#allocation9], 4294965760 }
  0x1e   :  { %946 = dma.done.wait [#allocation12], 1536  }
  0x1f   :  { %947 = vsyncadd [#allocation12], 4294965760  ;;  %v715_v0 = vld [vmem:[#allocation7 + $0x38] sm:$0xff]  ;;  %v714_v2 = vld [vmem:[#allocation7 + $0x30] sm:$0xff]  ;;  %vm407_vm0 = vcmask 523264   ;;  %s961_s6 = smov [#allocation14]  }
  0x20   :  { %v723_v1 = vld [vmem:[#allocation8 + $0x38] sm:$0xff]  ;;  %253 = vmatpush.bf16.msra.mxu0 %v715_v0  ;;  %v722_v3 = vld [vmem:[#allocation8 + $0x30] sm:$0xff]  ;;  %v713_v4 = vld [vmem:[#allocation7 + $0x28] sm:$0xff]  ;;  %s589_s29 = sshll.u32 %s961_s6, 4  ;;  %s591_s1 = sshll.u32 %s1055_s7, 4  ;;  %s590_s29 = int_to_ptr.vmem [resolvable:$true] %s589_s29  ;;  %s592_s1 = int_to_ptr.hbm [resolvable:$true] %s591_s1 }
  0x21   :  { %346 = vmatpush.bf16.msra.mxu1 %v723_v1  ;;  %v721_v5 = vld [vmem:[#allocation8 + $0x28] sm:$0xff]  ;;  %v137_v6 = vld [vmem:[#allocation5] sm:$0xff]  ;;  %v139_v10 = vld [vmem:[#allocation5 + $0x10] sm:$0xff] }
  0x22   :  { %v138_v7 = vld [vmem:[#allocation5 + $0x8] sm:$0xff]  ;;  %v145_v8 = vld [vmem:[#allocation2] sm:$0xff]  ;;  %v140_v13 = vld [vmem:[#allocation5 + $0x18] sm:$0xff] }
  0x23   :  { %v146_v9 = vld [vmem:[#allocation2 + $0x8] sm:$0xff]  ;;  %v153_v11 = vsub.f32 %v137_v6, %v145_v8  ;;  %v147_v14 = vld [vmem:[#allocation2 + $0x10] sm:$0xff]  ;;  %v148_v15 = vld [vmem:[#allocation2 + $0x18] sm:$0xff] }
  0x24   :  { %254 = vmatpush.bf16.msra.mxu0 %v714_v2  ;;  %v154_v12 = vsub.f32 %v138_v7, %v146_v9  ;;  %v155_v16 = vsub.f32 %v139_v10, %v147_v14  ;;  %v156_v19 = vsub.f32 %v140_v13, %v148_v15  ;;  %v712_v20 = vld [vmem:[#allocation7 + $0x20] sm:$0xff]  ;;  %v711_v26 = vld [vmem:[#allocation7 + $0x18] sm:$0xff]  ;;  %v710_v29 = vld [vmem:[#allocation7 + $0x10] sm:$0xff] }
  0x25   :  { %347 = vmatpush.bf16.msra.mxu1 %v722_v3  ;;  %v161_v17 = vmul.f32 %v153_v11, %v153_v11  ;;  %v720_v21 = vld [vmem:[#allocation8 + $0x20] sm:$0xff]  ;;  %v719_v27 = vld [vmem:[#allocation8 + $0x18] sm:$0xff]  ;;  %v718_v30 = vld [vmem:[#allocation8 + $0x10] sm:$0xff] }
  0x26   :  { %v162_v18 = vmul.f32 %v154_v12, %v154_v12  ;;  %v163_v22 = vmul.f32 %v155_v16, %v155_v16  ;;  %v164_v24 = vmul.f32 %v156_v19, %v156_v19  ;;  %v709_v31 = vld [vmem:[#allocation7 + $0x8] sm:$0xff]  ;;  %v708_v33 = vld [vmem:[#allocation7] sm:$0xff]  ;;  %v185_v35 = vpack.c.bf16 %v154_v12, %v153_v11  ;;  %v143_v44 = vld [vmem:[#allocation5 + $0x30] sm:$0xff] }
  0x27   :  { %v717_v32 = vld [vmem:[#allocation8 + $0x8] sm:$0xff]  ;;  %v716_v34 = vld [vmem:[#allocation8] sm:$0xff]  ;;  %v186_v36 = vpack.c.bf16 %v156_v19, %v155_v16  ;;  %v144_v45 = vld [vmem:[#allocation5 + $0x38] sm:$0xff] }
  0x28   :  { %255 = vmatpush.bf16.msra.mxu0 %v713_v4  ;;  %v169_v23 = vadd.f32 %v162_v18, %v161_v17  ;;  %v141_v37 = vld [vmem:[#allocation5 + $0x20] sm:$0xff]  ;;  %v142_v38 = vld [vmem:[#allocation5 + $0x28] sm:$0xff]  ;;  %v151_v46 = vld [vmem:[#allocation2 + $0x30] sm:$0xff] }
  0x29   :  { %348 = vmatpush.bf16.msra.mxu1 %v721_v5  ;;  %v149_v39 = vld [vmem:[#allocation2 + $0x20] sm:$0xff]  ;;  %v150_v40 = vld [vmem:[#allocation2 + $0x28] sm:$0xff]  ;;  %v152_v47 = vld [vmem:[#allocation2 + $0x38] sm:$0xff]  ;;  %v159_v48 = vsub.f32 %v143_v44, %v151_v46 }
  0x2a   :  { %v170_v25 = vadd.f32 %v169_v23, %v163_v22  ;;  %v1034_v41 = vsub.f32 %v141_v37, %v149_v39  ;;  %v1036_v42 = vsub.f32 %v142_v38, %v150_v40  ;;  %v160_v49 = vsub.f32 %v144_v45, %v152_v47  ;;  %v724_v11 = vld [vmem:[#allocation10] sm:$0xff]  ;;  %v725_v13 = vld [vmem:[#allocation10 + $0x8] sm:$0xff]  ;;  %v726_v15 = vld [vmem:[#allocation10 + $0x10] sm:$0xff] }
  0x2b   :  { %v728_v12 = vld [vmem:[#allocation11] sm:$0xff]  ;;  %v729_v14 = vld [vmem:[#allocation11 + $0x8] sm:$0xff]  ;;  %v730_v16 = vld [vmem:[#allocation11 + $0x10] sm:$0xff] }
  0x2c   :  { %256 = vmatpush.bf16.msra.mxu0 %v712_v20  ;;  %v1032_v28 = vadd.f32 %v170_v25, %v164_v24  ;;  %v187_v43 = vpack.c.bf16 %v1036_v42, %v1034_v41  ;;  %v188_v50 = vpack.c.bf16 %v160_v49, %v159_v48  ;;  %v727_v17 = vld [vmem:[#allocation10 + $0x18] sm:$0xff]  ;;  %v166_v24 = vmul.f32 %v1036_v42, %v1036_v42  ;;  %v531_v39 = vld [vmem:[#allocation13 + $0x8] sm:$0xff]  ;;  %v530_v44 = vld [vmem:[#allocation13] sm:$0xff] }
  0x2d   :  { %349 = vmatpush.bf16.msra.mxu1 %v720_v21  ;;  %v731_v18 = vld [vmem:[#allocation11 + $0x18] sm:$0xff]  ;;  %v165_v21 = vmul.f32 %v1034_v41, %v1034_v41 }
  0x2e   :  { %v533_v47 = vld [vmem:[#allocation13 + $0x18] sm:$0xff] }
  0x2f   :  { %v172_v25 = vadd.f32 %v1032_v28, %v165_v21  ;;  %v532_v28 = vld [vmem:[#allocation13 + $0x10] sm:$0xff] }
  0x30   :  { %257 = vmatpush.bf16.msra.mxu0 %v711_v26  ;;  %v167_v26 = vmul.f32 %v159_v48, %v159_v48 }
  0x31   :  { %350 = vmatpush.bf16.msra.mxu1 %v719_v27  ;;  %v173_v27 = vadd.f32 %v172_v25, %v166_v24 }
  0x34   :  { %258 = vmatpush.bf16.msra.mxu0 %v710_v29  ;;  %v168_v29 = vmul.f32 %v160_v49, %v160_v49 }
  0x35   :  { %351 = vmatpush.bf16.msra.mxu1 %v718_v30  ;;  %v174_v30 = vadd.f32 %v173_v27, %v167_v26 }
  0x38   :  { %259 = vmatpush.bf16.msra.mxu0 %v709_v31 }
  0x39   :  { %352 = vmatpush.bf16.msra.mxu1 %v717_v32 }
  0x3c   :  { %260 = vmatpush.bf16.msra.mxu0 %v708_v33  ;;  %v175_v33 = vadd.f32 %v174_v30, %v168_v29 }
  0x3d   :  { %353 = vmatpush.bf16.msra.mxu1 %v716_v34 }
  0x3e   :  { %176 = vadd.xlane.f32.xlu0 %v175_v33  ;;  %v570_v33 = vlaneseq }
  0x3f   :  { %261 = vmatmul.bf16.vlgmr.msra.gmra.mxu0 %v185_v35 }
  0x40   :  { %354 = vmatmul.bf16.vlgmr.msra.gmra.mxu1 %v185_v35 }
  0x4f   :  { %266 = vmatmul.bf16.gmra.mxu0 %v186_v36 }
  0x50   :  { %359 = vmatmul.bf16.gmra.mxu1 %v186_v36 }
  0x5f   :  { %271 = vmatmul.bf16.gmra.mxu0 %v187_v43 }
  0x60   :  { %364 = vmatmul.bf16.gmra.mxu1 %v187_v43 }
  0x6f   :  { %276 = vmatmul.bf16.gmra.mxu0 %v188_v50 }
  0x70   :  { %369 = vmatmul.bf16.gmra.mxu1 %v188_v50 }
  0xbc   :  { %v262_v51 = vpop.f32.mrf.mxu0 }
  0xbd   :  { %v355_v52 = vpop.f32.mrf.mxu1 }
  0xc4   :  { %v264_v53 = vpop.f32.mrf.mxu0 }
  0xc5   :  { %v357_v54 = vpop.f32.mrf.mxu1  ;;  %v383_v9 = vpack.c.bf16 %v264_v53, %v262_v51  ;;  %v534_v51 = vld [vmem:[#allocation13 + $0x20] sm:$0xff] }
  0xc6   :  { %v457_v10 = vpack.c.bf16 %v357_v54, %v355_v52 }
  0xcc   :  { %v267_v55 = vpop.f32.mrf.mxu0 }
  0xcd   :  { %v360_v56 = vpop.f32.mrf.mxu1 }
  0xd4   :  { %v269_v57 = vpop.f32.mrf.mxu0 }
  0xd5   :  { %v362_v58 = vpop.f32.mrf.mxu1  ;;  %v384_v7 = vpack.c.bf16 %v269_v57, %v267_v55  ;;  %v535_v55 = vld [vmem:[#allocation13 + $0x28] sm:$0xff] }
  0xd6   :  { %v458_v8 = vpack.c.bf16 %v362_v58, %v360_v56 }
  0xdc   :  { %v272_v59 = vpop.f32.mrf.mxu0 }
  0xdd   :  { %v365_v60 = vpop.f32.mrf.mxu1 }
  0xe4   :  { %v274_v61 = vpop.f32.mrf.mxu0 }
  0xe5   :  { %v367_v62 = vpop.f32.mrf.mxu1  ;;  %v385_v5 = vpack.c.bf16 %v274_v61, %v272_v59 }
  0xe6   :  { %v459_v6 = vpack.c.bf16 %v367_v62, %v365_v60  ;;  %v536_v62 = vld [vmem:[#allocation13 + $0x30] sm:$0xff] }
  0xec   :  { %v277_v63 = vpop.f32.mrf.mxu0 }
  0xed   :  { %v370_v0 = vpop.f32.mrf.mxu1 }
  0xf4   :  { %v279_v1 = vpop.f32.mrf.mxu0 }
  0xf5   :  { %v372_v2 = vpop.f32.mrf.mxu1  ;;  %v386_v3 = vpack.c.bf16 %v279_v1, %v277_v63 }
  0xf6   :  { %v460_v4 = vpack.c.bf16 %v372_v2, %v370_v0 }
  0xf7   :  { %424 = vmatpush.bf16.msra.mxu2 %v386_v3 }
  0xf8   :  { %497 = vmatpush.bf16.msra.mxu3 %v460_v4 }
  0xfb   :  { %425 = vmatpush.bf16.msra.mxu2 %v385_v5 }
  0xfc   :  { %498 = vmatpush.bf16.msra.mxu3 %v459_v6 }
  0xff   :  { %426 = vmatpush.bf16.msra.mxu2 %v384_v7 }
 0x100   :  { %499 = vmatpush.bf16.msra.mxu3 %v458_v8 }
 0x103   :  { %427 = vmatpush.bf16.msra.mxu2 %v383_v9  ;;  %v537_v9 = vld [vmem:[#allocation13 + $0x38] sm:$0xff] }
 0x104   :  { %500 = vmatpush.bf16.msra.mxu3 %v457_v10 }
 0x106   :  { %684 = vmatmul.msk.bf16.vlgmr.msra.gmra.mxu2 %vm407_vm0, %v724_v11 }
 0x107   :  { %704 = vmatmul.msk.bf16.vlgmr.msra.gmra.mxu3 %vm407_vm0, %v728_v12 }
 0x116   :  { %685 = vmatmul.msk.bf16.gmra.mxu2 %vm407_vm0, %v725_v13 }
 0x117   :  { %705 = vmatmul.msk.bf16.gmra.mxu3 %vm407_vm0, %v729_v14 }
 0x126   :  { %686 = vmatmul.msk.bf16.gmra.mxu2 %vm407_vm0, %v726_v15 }
 0x127   :  { %706 = vmatmul.msk.bf16.gmra.mxu3 %vm407_vm0, %v730_v16 }
 0x136   :  { %687 = vmatmul.msk.bf16.gmra.mxu2 %vm407_vm0, %v727_v17 }
 0x137   :  { %707 = vmatmul.msk.bf16.gmra.mxu3 %vm407_vm0, %v731_v18  ;;  %v177_v18 = vpop.xlane.xlu0 %176 }
 0x189   :  { %v429_v19 = vpop.f32.mrf.mxu2 }
 0x18a   :  { %v502_v20 = vpop.f32.mrf.mxu3 }
 0x18b   :  { %v522_v43 = vsub.f32 %v429_v19, %v502_v20  ;;  %v178_v19 = vrot.slane %v177_v18, 4 }
 0x18d   :  { %v538_v48 = vmul.f32 %v530_v44, %v522_v43  ;;  %v179_v20 = vadd.f32 %v178_v19, %v177_v18 }
 0x18f   :  { %v546_v58 = vmul.f32 %v538_v48, %v538_v48  ;;  %v180_v21 = vrot.slane %v179_v20, 2 }
 0x191   :  { %v431_v22 = vpop.f32.mrf.mxu2 }
 0x192   :  { %v504_v23 = vpop.f32.mrf.mxu3 }
 0x193   :  { %v523_v38 = vsub.f32 %v431_v22, %v504_v23  ;;  %v181_v22 = vadd.f32 %v180_v21, %v179_v20 }
 0x195   :  { %v539_v45 = vmul.f32 %v531_v39, %v523_v38  ;;  %v182_v23 = vrot.slane %v181_v22, 1 }
 0x197   :  { %v547_v52 = vmul.f32 %v539_v45, %v539_v45  ;;  %v183_v24 = vadd.f32 %v182_v23, %v181_v22 }
 0x199   :  { %v434_v31 = vpop.f32.mrf.mxu2  ;;  %v554_v63 = vadd.f32 %v547_v52, %v546_v58  ;;  %732 = vpush %v183_v24 }
 0x19a   :  { %v507_v32 = vpop.f32.mrf.mxu3 }
 0x19b   :  { %v524_v42 = vsub.f32 %v434_v31, %v507_v32 }
 0x19d   :  { %v540_v49 = vmul.f32 %v532_v28, %v524_v42 }
 0x19f   :  { %v548_v59 = vmul.f32 %v540_v49, %v540_v49 }
 0x1a1   :  { %v436_v34 = vpop.f32.mrf.mxu2  ;;  %v555_v2 = vadd.f32 %v554_v63, %v548_v59 }
 0x1a2   :  { %v509_v35 = vpop.f32.mrf.mxu3 }
 0x1a3   :  { %v525_v46 = vsub.f32 %v436_v34, %v509_v35  ;;  %v571_v34 = vshrl.u32 %v570_v33, 7  ;;  %v573_v35 = vand.u32 127, %v570_v33 }
 0x1a5   :  { %v541_v53 = vmul.f32 %v533_v47, %v525_v46  ;;  %vm574_vm1 = vcmp.eq.s32.totalorder %v571_v34, 0  ;;  %vm577_vm2 = vcmp.eq.s32.totalorder %v573_v35, 1  ;;  %vm575_vm3 = vcmp.eq.s32.totalorder %v573_v35, 0 }
 0x1a6   :  { %vm578_vm4 = vmand %vm574_vm1, %vm577_vm2 }
 0x1a7   :  { %v549_v0 = vmul.f32 %v541_v53, %v541_v53  ;;  %vm576_vm5 = vmand %vm574_vm1, %vm575_vm3 }
 0x1a9   :  { %v439_v36 = vpop.f32.mrf.mxu2  ;;  %v556_v5 = vadd.f32 %v555_v2, %v549_v0 }
 0x1aa   :  { %v512_v37 = vpop.f32.mrf.mxu3 }
 0x1ab   :  { %v526_v50 = vsub.f32 %v439_v36, %v512_v37 }
 0x1ad   :  { %v542_v60 = vmul.f32 %v534_v51, %v526_v50 }
 0x1af   :  { %v550_v3 = vmul.f32 %v542_v60, %v542_v60 }
 0x1b1   :  { %v441_v40 = vpop.f32.mrf.mxu2  ;;  %v557_v10 = vadd.f32 %v556_v5, %v550_v3 }
 0x1b2   :  { %v514_v41 = vpop.f32.mrf.mxu3 }
 0x1b3   :  { %v527_v54 = vsub.f32 %v441_v40, %v514_v41 }
 0x1b5   :  { %v543_v1 = vmul.f32 %v535_v55, %v527_v54 }
 0x1b7   :  { %v551_v6 = vmul.f32 %v543_v1, %v543_v1 }
 0x1b9   :  { %v444_v56 = vpop.f32.mrf.mxu2  ;;  %v558_v13 = vadd.f32 %v557_v10, %v551_v6 }
 0x1ba   :  { %v517_v57 = vpop.f32.mrf.mxu3 }
 0x1bb   :  { %v528_v61 = vsub.f32 %v444_v56, %v517_v57 }
 0x1bd   :  { %v544_v4 = vmul.f32 %v536_v62, %v528_v61 }
 0x1bf   :  { %v552_v11 = vmul.f32 %v544_v4, %v544_v4 }
 0x1c1   :  { %v446_v7 = vpop.f32.mrf.mxu2  ;;  %v559_v16 = vadd.f32 %v558_v13, %v552_v11 }
 0x1c2   :  { %v519_v8 = vpop.f32.mrf.mxu3 }
 0x1c3   :  { %v529_v12 = vsub.f32 %v446_v7, %v519_v8 }
 0x1c5   :  { %v545_v14 = vmul.f32 %v537_v9, %v529_v12 }
 0x1c7   :  { %v553_v15 = vmul.f32 %v545_v14, %v545_v14 }
 0x1c9   :  { %v560_v17 = vadd.f32 %v559_v16, %v553_v15 }
 0x1ca   :  { %s733_s4 = spop %732 }
 0x1cb   :  { %561 = vadd.xlane.f32.xlu0 %v560_v17  ;;  %v579_v36 = vstv %s733_s4 }
 0x1cc   :  { %v580_v37 = vsel %vm578_vm4, %v579_v36, 0.0 }
 0x23e   :  { %v562_v25 = vpop.xlane.xlu0 %561 }
 0x23f   :  { %v563_v26 = vrot.slane %v562_v25, 4 }
 0x241   :  { %v564_v27 = vadd.f32 %v563_v26, %v562_v25 }
 0x243   :  { %v565_v29 = vrot.slane %v564_v27, 2 }
 0x245   :  { %v566_v30 = vadd.f32 %v565_v29, %v564_v27 }
 0x247   :  { %v567_v31 = vrot.slane %v566_v30, 1 }
 0x249   :  { %v568_v32 = vadd.f32 %v567_v31, %v566_v30 }
 0x24b   :  { %734 = vpush %v568_v32 }
 0x27c   :  { %s735_s15 = spop %734 }
 0x27d   :  { %v581_v38 = vstv %s735_s15 }
 0x27e   :  { %v582_v39 = vsel %vm576_vm5, %v581_v38, %v580_v37 }
 0x27f   :  { %583 = vst [vmem:[#allocation14] sm:$0xff] %v582_v39 }
 0x280   :  { %594 = dma.vmem_to_hbm [thread:$0]  %s590_s29, 128, %s592_s1, [#allocation4]  }
 0x281   :  { %948 = dma.done.wait [#allocation4], 128  }
 0x282   :  { %949 = vsyncadd [#allocation4], 4294967168 }
 0x283   :  { %599 = vsyncpa [#allocation3], 1 }
 0x284   :  { %600 = vsyncpa [#allocation6], 1 }
 0x285   :  { %601 = vsyncpa [#allocation9], 1 }
 0x286   :  { %602 = vsyncpa [#allocation12], 1 }
 0x287   :  { %603 = vsyncpa [#allocation4], 1 }

</bundles_post_ra>
